<compile_context>
chip_gen: v5e
topology: v5e:2x2
jax: 0.10.0
libtpu: 0.0.40
codegen_flags: <defaults>
</compile_context>

<pallas_src>
import numpy as np
import jax
import jax.numpy as jnp
from jax.experimental import pallas as pl
from jax.experimental.pallas import tpu as pltpu


# ----------------------------------------------------------------------------
# Kernel 1: hoisted input projection  gate_x = x @ Wx + b_combined
# ----------------------------------------------------------------------------
def _proj_kernel(x_ref, w_ref, b_ref, o_ref):
    o_ref[...] = (jnp.dot(x_ref[...], w_ref[...],
                          preferred_element_type=jnp.float32) + b_ref[...])


def _input_projection(x_flat, wx, b_row, *, row_block=512):
    """x_flat: [M, I], wx: [I, 3H], b_row: [1, 3H] -> [M, 3H] (one big matmul)."""
    M, I = x_flat.shape
    N = wx.shape[1]
    if M <= row_block:
        tm, Mp = M, M
    else:
        tm = row_block                       # multiple of 8 -> (8,128) rule ok
        Mp = pl.cdiv(M, tm) * tm
        x_flat = jnp.pad(x_flat, ((0, Mp - M), (0, 0)))

    out = pl.pallas_call(
        _proj_kernel,
        out_shape=jax.ShapeDtypeStruct((Mp, N), jnp.float32),
        grid_spec=pltpu.PrefetchScalarGridSpec(
            num_scalar_prefetch=0,
            grid=(Mp // tm,),
            in_specs=[
                pl.BlockSpec((tm, I), lambda m: (m, 0)),
                pl.BlockSpec((I, N), lambda m: (0, 0)),
                pl.BlockSpec((1, N), lambda m: (0, 0)),
            ],
            out_specs=pl.BlockSpec((tm, N), lambda m: (m, 0)),
        ),
        compiler_params=pltpu.CompilerParams(dimension_semantics=("parallel",)),
    )(x_flat, wx, b_row)
    return out[:M]


# ----------------------------------------------------------------------------
# Kernel 2: serial AUGRU recurrence (time-blocked), only h @ Wh per step.
# ----------------------------------------------------------------------------
def _augru_recurrent_kernel(gx_ref, attn_ref, mask_ref, wh_ref, bhn_ref,
                            out_ref, outh_ref, h_scratch):
    t_blk = pl.program_id(1)

    @pl.when(t_blk == 0)
    def _():
        # h = zeros(batch_sizes[0], hidden_size)
        h_scratch[...] = jnp.zeros_like(h_scratch)

    H = h_scratch.shape[-1]
    TT = gx_ref.shape[0]

    wh = wh_ref[...]            # [H, 3H]  loaded once per time block
    bh_n = bhn_ref[...]         # [1, H]   only the "new" chunk bias stays here

    def step(tt, h):
        gx = gx_ref[tt]                                           # [Bb, 3H]
        gh = jnp.dot(h, wh, preferred_element_type=jnp.float32)   # [Bb, 3H]
        i_u, i_r, i_n = gx[:, :H], gx[:, H:2 * H], gx[:, 2 * H:]
        h_u, h_r = gh[:, :H], gh[:, H:2 * H]
        h_n = gh[:, 2 * H:] + bh_n
        attn = attn_ref[tt]                                       # [Bb, 1]
        update_gate = jax.nn.sigmoid(i_u + h_u) * attn
        reset_gate = jax.nn.sigmoid(i_r + h_r)
        new_gate = jnp.tanh(i_n + reset_gate * h_n)
        hy = h + update_gate * (new_gate - h)
        mask = mask_ref[tt] > 0.0                                  # [Bb, 1]
        out_ref[tt] = jnp.where(mask, hy, jnp.zeros_like(hy))
        return jnp.where(mask, hy, h)         # carry h unchanged when inactive

    h_final = jax.lax.fori_loop(0, TT, step, h_scratch[...], unroll=True)
    h_scratch[...] = h_final

    @pl.when(t_blk == pl.num_programs(1) - 1)
    def _():
        outh_ref[...] = h_final               # last valid h per row


def dynamic_gru_augru(x_tbi, attn_tb, lengths, wx, bx, wh, bh,
                      *, time_block=8, batch_blocks=1):
    """x_tbi: [T, B, I] f32, attn_tb: [T, B] f32, lengths: [B] int32 (sorted desc).
    Returns (outputs [T, B, H] padded-packed, output_h [B, H])."""
    T, B, I = x_tbi.shape
    H = wh.shape[0]

    assert B % batch_blocks == 0
    Bb = B // batch_blocks
    # Mosaic (8,128) rule: a batch sub-block must be sublane aligned or full B.
    assert Bb == B or Bb % 8 == 0, "batch sub-blocks must be multiples of 8"

    TT = min(time_block, T)
    Tp = pl.cdiv(T, TT) * TT
    if Tp != T:
        x_tbi = jnp.pad(x_tbi, ((0, Tp - T), (0, 0), (0, 0)))
        attn_tb = jnp.pad(attn_tb, ((0, Tp - T), (0, 0)))
    nt = Tp // TT

    # Validity mask (padded timesteps are automatically invalid).
    mask = (jnp.arange(Tp)[:, None] < lengths[None, :]).astype(jnp.float32)[:, :, None]
    attn = attn_tb[:, :, None].astype(jnp.float32)

    # Fold bh_u / bh_r into the hoisted projection bias; keep bh_n separate
    # (it is multiplied by the reset gate inside the recurrence).
    bx = bx.astype(jnp.float32)
    bh = bh.astype(jnp.float32)
    b_comb = bx + jnp.concatenate([bh[:H], bh[H:2 * H], jnp.zeros((H,), jnp.float32)])
    bh_n_row = bh[2 * H:].reshape(1, H)

    # --- hoisted, parallel input projection: one [Tp*B, I] @ [I, 3H] matmul ---
    gate_x = _input_projection(
        x_tbi.reshape(Tp * B, I).astype(jnp.float32),
        wx.astype(jnp.float32),
        b_comb.reshape(1, 3 * H),
    ).reshape(Tp, B, 3 * H)

    # --- serial recurrence over time blocks ---
    outputs, output_h = pl.pallas_call(
        _augru_recurrent_kernel,
        out_shape=(jax.ShapeDtypeStruct((Tp, B, H), jnp.float32),
                   jax.ShapeDtypeStruct((B, H), jnp.float32)),
        grid_spec=pltpu.PrefetchScalarGridSpec(
            num_scalar_prefetch=0,
            grid=(batch_blocks, nt),   # (independent batch blocks, time blocks)
            in_specs=[
                pl.BlockSpec((TT, Bb, 3 * H), lambda b, t: (t, b, 0)),  # gate_x
                pl.BlockSpec((TT, Bb, 1), lambda b, t: (t, b, 0)),      # attn
                pl.BlockSpec((TT, Bb, 1), lambda b, t: (t, b, 0)),      # mask
                pl.BlockSpec((H, 3 * H), lambda b, t: (0, 0)),          # Wh (resident)
                pl.BlockSpec((1, H), lambda b, t: (0, 0)),              # bh_n (resident)
            ],
            out_specs=[
                pl.BlockSpec((TT, Bb, H), lambda b, t: (t, b, 0)),      # packed outputs
                pl.BlockSpec((Bb, H), lambda b, t: (b, 0)),             # output_h (resident over t)
            ],
            scratch_shapes=[pltpu.VMEM((Bb, H), jnp.float32)],          # carried hidden state
        ),
        compiler_params=pltpu.CompilerParams(
            # batch blocks are independent ("parallel": v7x can shard them
            # across its two TensorCores); the time axis is a recurrence.
            dimension_semantics=("parallel", "arbitrary")),
    )(gate_x, attn, mask, wh.astype(jnp.float32), bh_n_row)

    return outputs[:T], output_h


# ----------------------------------------------------------------------------
# Pure-numpy emulation of the PyTorch packed-sequence loop (reference).
# ----------------------------------------------------------------------------
def _ref_dynamic_gru(x_tbi, attn_tb, lengths, wx, bx, wh, bh):
    x = np.asarray(x_tbi, np.float32)
    attn = np.asarray(attn_tb, np.float32)
    lengths = np.asarray(lengths)
    wx = np.asarray(wx, np.float32); bx = np.asarray(bx, np.float32)
    wh = np.asarray(wh, np.float32); bh = np.asarray(bh, np.float32)
    T, B, _ = x.shape
    H = wh.shape[0]
    batch_sizes = [int((lengths > t).sum()) for t in range(T)]

    def sigmoid(v):
        return 1.0 / (1.0 + np.exp(-v))

    h = np.zeros((batch_sizes[0], H), np.float32)
    out = np.zeros((T, B, H), np.float32)
    output_h = np.zeros((batch_sizes[0], H), np.float32)
    for t, bs in enumerate(batch_sizes):
        if bs == 0:
            continue
        _x, _h, _a = x[t, :bs], h[:bs], attn[t, :bs]
        gx = _x @ wx + bx
        gh = _h @ wh + bh
        i_u, i_r, i_n = np.split(gx, 3, axis=1)
        h_u, h_r, h_n = np.split(gh, 3, axis=1)
        u = sigmoid(i_u + h_u) * _a[:, None]
        r = sigmoid(i_r + h_r)
        n = np.tanh(i_n + r * h_n)
        hy = _h + u * (n - _h)
        out[t, :bs] = hy
        output_h[:bs] = hy
        h[:bs] = hy
    return out, output_h


if __name__ == "__main__":
    B, T, I, H = 8, 12, 16, 32   # batch, seq len, input_size, hidden_size
    key = jax.random.PRNGKey(0)
    k1, k2, k3, k4, k5, k6 = jax.random.split(key, 6)

    # Deterministic synthetic parameters (shapes from AUGRUCell.__init__,
    # stored as [in_features, 3*hidden]).
    wx = jax.random.normal(k1, (I, 3 * H), jnp.float32) * 0.1
    bx = jax.random.normal(k2, (3 * H,), jnp.float32) * 0.1
    wh = jax.random.normal(k3, (H, 3 * H), jnp.float32) * 0.1
    bh = jax.random.normal(k4, (3 * H,), jnp.float32) * 0.1

    # Inputs. Lengths sorted descending == PackedSequence ordering
    # (sorted_indices / unsorted_indices are identity here — the final gather
    #  output_h[unsorted_indices] is plain-JAX glue and omitted as identity).
    x_tbi = jax.random.normal(k5, (T, B, I), jnp.float32)
    attn_tb = jax.random.uniform(k6, (T, B), jnp.float32)
    lengths = jnp.array([12, 12, 10, 8, 6, 4, 2, 1], jnp.int32)

    outputs, output_h = dynamic_gru_augru(x_tbi, attn_tb, lengths,
                                          wx, bx, wh, bh, time_block=8)
    jax.block_until_ready((outputs, output_h))

    ref_out, ref_h = _ref_dynamic_gru(x_tbi, attn_tb, lengths, wx, bx, wh, bh)
    np.testing.assert_allclose(np.asarray(outputs), ref_out, rtol=1e-4, atol=1e-4)
    np.testing.assert_allclose(np.asarray(output_h), ref_h, rtol=1e-4, atol=1e-4)

    print("KERNEL_OK")
</pallas_src>

<mosaic_0001>
module attributes {stable_mosaic.version = 11 : i64} {
  func.func @_proj_kernel(%arg0: i32, %arg1: memref<128x16xf32, #tpu.memory_space<vmem>>, %arg2: memref<16x96xf32, #tpu.memory_space<vmem>>, %arg3: memref<1x96xf32, #tpu.memory_space<vmem>>, %arg4: memref<128x96xf32, #tpu.memory_space<vmem>>) attributes {dimension_semantics = [#tpu.dimension_semantics<parallel>], iteration_bounds = array<i64: 1>, scalar_prefetch = 0 : i64, scratch_operands = 0 : i64, tpu.core_type = #tpu.core_type<tc>, window_params = [{transform_indices = @transform_0, window_bounds = array<i64: 128, 16>}, {pipeline_mode = #tpu.pipeline_mode<synchronous>, transform_indices = @transform_1, window_bounds = array<i64: 16, 96>}, {pipeline_mode = #tpu.pipeline_mode<synchronous>, transform_indices = @transform_2, window_bounds = array<i64: 1, 96>}, {transform_indices = @transform_3, window_bounds = array<i64: 128, 96>}]} {
    %c0 = arith.constant 0 : index
    %c0_0 = arith.constant 0 : index
    %0 = vector.load %arg1[%c0, %c0_0] : memref<128x16xf32, #tpu.memory_space<vmem>>, vector<128x16xf32>
    %c0_1 = arith.constant 0 : index
    %c0_2 = arith.constant 0 : index
    %1 = vector.load %arg2[%c0_1, %c0_2] : memref<16x96xf32, #tpu.memory_space<vmem>>, vector<16x96xf32>
    %cst = arith.constant dense<0.000000e+00> : vector<128x96xf32>
    %2 = tpu.matmul %0, %1, %cst {dimension_numbers = #tpu.dot_dimension_numbers<[1], [0], [0], [1], [0, 0, 1, 1], [], []>} : vector<128x16xf32>, vector<16x96xf32>, vector<128x96xf32> -> vector<128x96xf32>
    %c0_3 = arith.constant 0 : index
    %c0_4 = arith.constant 0 : index
    %3 = vector.load %arg3[%c0_3, %c0_4] : memref<1x96xf32, #tpu.memory_space<vmem>>, vector<1x96xf32>
    %4 = vector.broadcast %3 : vector<1x96xf32> to vector<128x96xf32>
    %5 = arith.addf %2, %4 : vector<128x96xf32>
    %c0_5 = arith.constant 0 : index
    %c0_6 = arith.constant 0 : index
    %6 = vector.load %arg4[%c0_5, %c0_6] : memref<128x96xf32, #tpu.memory_space<vmem>>, vector<128x96xf32>
    tpu.vector_store %arg4[%c0_5, %c0_6], %5 {strides = array<i32>} : memref<128x96xf32, #tpu.memory_space<vmem>>, vector<128x96xf32>,
    return
  }
  func.func @transform_0(%arg0: i32) -> (i32, i32) {
    %c0_i32 = arith.constant 0 : i32
    %c0_i32_0 = arith.constant 0 : i32
    return %arg0, %c0_i32 : i32, i32
  }
  func.func @transform_1(%arg0: i32) -> (i32, i32) {
    %c0_i32 = arith.constant 0 : i32
    %c0_i32_0 = arith.constant 0 : i32
    %c0_i32_1 = arith.constant 0 : i32
    return %c0_i32, %c0_i32_0 : i32, i32
  }
  func.func @transform_2(%arg0: i32) -> (i32, i32) {
    %c0_i32 = arith.constant 0 : i32
    %c0_i32_0 = arith.constant 0 : i32
    %c0_i32_1 = arith.constant 0 : i32
    return %c0_i32, %c0_i32_0 : i32, i32
  }
  func.func @transform_3(%arg0: i32) -> (i32, i32) {
    %c0_i32 = arith.constant 0 : i32
    %c0_i32_0 = arith.constant 0 : i32
    return %arg0, %c0_i32 : i32, i32
  }
}

</mosaic_0001>

<bundles_post_ra>
// kernel: tpu_custom_call.1
= control target key start
LH: loop header
LB: loop body
LE: loop exit
PB: predicated region body
PF: predicated region fallthrough
CT: control target
= control target key end

     0   :  { %vm36_vm0 = vcmask 130048   ;;  %vm150_vm1 = vcmask 785408   ;;  %s351_s1 = inlined_call_operand.vmem [shape: f32[16,96], index: 1, kind: input, shape index: {}]   ;;  %s352_s0 = inlined_call_operand.vmem [shape: f32[128,16], index: 0, kind: input, shape index: {}]   ;;  %s353_s2 = inlined_call_operand.vmem [shape: f32[1,96], index: 2, kind: input, shape index: {}]   ;;  %s354_s3 = inlined_call_operand.vmem [shape: f32[128,96], index: 3, kind: output, shape index: {}]  }
   0x1   :  { %v31_v0 = vld [vmem:[%s351_s1 + $0x8] sm:$0xff]  ;;  %v30_v1 = vld [vmem:[%s351_s1] sm:$0xff]  ;;  %v24_v10 = vld [vmem:[%s352_s0 + $0x50] sm:$0xff] }
   0x2   :  { %188 = vmatpush.msra.mxu2 %v31_v0  ;;  %189 = vmatpush.msra.mxu3 %v31_v0  ;;  %v22_v2 = vld [vmem:[%s352_s0 + $0x40] sm:$0xff]  ;;  %v23_v6 = vld [vmem:[%s352_s0 + $0x48] sm:$0xff]  ;;  %v28_v11 = vld [vmem:[%s352_s0 + $0x70] sm:$0xff] }
   0x3   :  { %v26_v3 = vld [vmem:[%s352_s0 + $0x60] sm:$0xff]  ;;  %99 = vmatpush.msra.mxu0 %v31_v0  ;;  %187 = vmatpush.msra.mxu1 %v31_v0  ;;  %v27_v7 = vld [vmem:[%s352_s0 + $0x68] sm:$0xff]  ;;  %v16_v12 = vld [vmem:[%s352_s0 + $0x10] sm:$0xff] }
   0x4   :  { %191 = vmatpush.msra.mxu2 %v30_v1  ;;  %192 = vmatpush.msra.mxu3 %v30_v1  ;;  %v14_v4 = vld [vmem:[%s352_s0] sm:$0xff]  ;;  %v15_v8 = vld [vmem:[%s352_s0 + $0x8] sm:$0xff]  ;;  %v20_v13 = vld [vmem:[%s352_s0 + $0x30] sm:$0xff] }
   0x5   :  { %v18_v5 = vld [vmem:[%s352_s0 + $0x20] sm:$0xff]  ;;  %179 = vmatmul.msk.f32.vlgmr.msra.gmra.mxu2 %vm36_vm0, %v22_v2  ;;  %183 = vmatmul.msk.f32.vlgmr.msra.gmra.mxu3 %vm36_vm0, %v26_v3  ;;  %v19_v9 = vld [vmem:[%s352_s0 + $0x28] sm:$0xff]  ;;  %v25_v14 = vld [vmem:[%s352_s0 + $0x58] sm:$0xff] }
   0x6   :  { %100 = vmatpush.msra.mxu0 %v30_v1  ;;  %190 = vmatpush.msra.mxu1 %v30_v1  ;;  %v29_v15 = vld [vmem:[%s352_s0 + $0x78] sm:$0xff]  ;;  %v193_v18 = vld [vmem:[%s353_s2] ss:$0 sm:$0xff] }
   0x7   :  { %171 = vmatmul.msk.f32.vlgmr.msra.gmra.mxu0 %vm36_vm0, %v14_v4  ;;  %175 = vmatmul.msk.f32.vlgmr.msra.gmra.mxu1 %vm36_vm0, %v18_v5  ;;  %v17_v16 = vld [vmem:[%s352_s0 + $0x18] sm:$0xff] }
   0x8   :  { %v21_v17 = vld [vmem:[%s352_s0 + $0x38] sm:$0xff] }
   0xd   :  { %180 = vmatmul.msk.f32.gmra.mxu2 %vm36_vm0, %v23_v6  ;;  %184 = vmatmul.msk.f32.gmra.mxu3 %vm36_vm0, %v27_v7 }
   0xf   :  { %172 = vmatmul.msk.f32.gmra.mxu0 %vm36_vm0, %v15_v8  ;;  %176 = vmatmul.msk.f32.gmra.mxu1 %vm36_vm0, %v19_v9 }
  0x15   :  { %181 = vmatmul.msk.f32.gmra.mxu2 %vm36_vm0, %v24_v10  ;;  %185 = vmatmul.msk.f32.gmra.mxu3 %vm36_vm0, %v28_v11 }
  0x17   :  { %173 = vmatmul.msk.f32.gmra.mxu0 %vm36_vm0, %v16_v12  ;;  %177 = vmatmul.msk.f32.gmra.mxu1 %vm36_vm0, %v20_v13 }
  0x1d   :  { %182 = vmatmul.msk.f32.gmra.mxu2 %vm36_vm0, %v25_v14  ;;  %186 = vmatmul.msk.f32.gmra.mxu3 %vm36_vm0, %v29_v15 }
  0x1f   :  { %174 = vmatmul.msk.f32.gmra.mxu0 %vm36_vm0, %v17_v16  ;;  %178 = vmatmul.msk.f32.gmra.mxu1 %vm36_vm0, %v21_v17 }
  0x84   :  { %v102_v19 = vpop.f32.mrf.mxu0  ;;  %v114_v20 = vpop.f32.mrf.mxu1 }
  0x85   :  { %v103_v21 = vadd.f32 %v193_v18, %v102_v19  ;;  %v115_v22 = vadd.f32 %v193_v18, %v114_v20 }
  0x87   :  { %151 = vst.msk [vmem:[%s354_s3] sm:$0xff] %vm150_vm1, %v103_v21 }
  0x88   :  { %155 = vst.msk [vmem:[%s354_s3 + $0x20] sm:$0xff] %vm150_vm1, %v115_v22  ;;  %v126_v23 = vpop.f32.mrf.mxu2  ;;  %v138_v24 = vpop.f32.mrf.mxu3 }
  0x89   :  { %v127_v25 = vadd.f32 %v193_v18, %v126_v23  ;;  %v139_v26 = vadd.f32 %v193_v18, %v138_v24 }
  0x8b   :  { %159 = vst.msk [vmem:[%s354_s3 + $0x40] sm:$0xff] %vm150_vm1, %v127_v25 }
  0x8c   :  { %163 = vst.msk [vmem:[%s354_s3 + $0x60] sm:$0xff] %vm150_vm1, %v139_v26  ;;  %v105_v27 = vpop.f32.mrf.mxu0  ;;  %v117_v28 = vpop.f32.mrf.mxu1 }
  0x8d   :  { %v106_v29 = vadd.f32 %v193_v18, %v105_v27  ;;  %v118_v30 = vadd.f32 %v193_v18, %v117_v28 }
  0x8f   :  { %152 = vst.msk [vmem:[%s354_s3 + $0x8] sm:$0xff] %vm150_vm1, %v106_v29 }
  0x90   :  { %156 = vst.msk [vmem:[%s354_s3 + $0x28] sm:$0xff] %vm150_vm1, %v118_v30  ;;  %v129_v31 = vpop.f32.mrf.mxu2  ;;  %v141_v32 = vpop.f32.mrf.mxu3 }
  0x91   :  { %v130_v33 = vadd.f32 %v193_v18, %v129_v31  ;;  %v142_v34 = vadd.f32 %v193_v18, %v141_v32 }
  0x93   :  { %160 = vst.msk [vmem:[%s354_s3 + $0x48] sm:$0xff] %vm150_vm1, %v130_v33 }
  0x94   :  { %164 = vst.msk [vmem:[%s354_s3 + $0x68] sm:$0xff] %vm150_vm1, %v142_v34  ;;  %v108_v35 = vpop.f32.mrf.mxu0  ;;  %v120_v36 = vpop.f32.mrf.mxu1 }
  0x95   :  { %v109_v37 = vadd.f32 %v193_v18, %v108_v35  ;;  %v121_v38 = vadd.f32 %v193_v18, %v120_v36 }
  0x97   :  { %153 = vst.msk [vmem:[%s354_s3 + $0x10] sm:$0xff] %vm150_vm1, %v109_v37 }
  0x98   :  { %157 = vst.msk [vmem:[%s354_s3 + $0x30] sm:$0xff] %vm150_vm1, %v121_v38  ;;  %v132_v39 = vpop.f32.mrf.mxu2  ;;  %v144_v40 = vpop.f32.mrf.mxu3 }
  0x99   :  { %v133_v41 = vadd.f32 %v193_v18, %v132_v39  ;;  %v145_v42 = vadd.f32 %v193_v18, %v144_v40 }
  0x9b   :  { %161 = vst.msk [vmem:[%s354_s3 + $0x50] sm:$0xff] %vm150_vm1, %v133_v41 }
  0x9c   :  { %165 = vst.msk [vmem:[%s354_s3 + $0x70] sm:$0xff] %vm150_vm1, %v145_v42  ;;  %v111_v43 = vpop.f32.mrf.mxu0  ;;  %v123_v44 = vpop.f32.mrf.mxu1 }
  0x9d   :  { %v112_v45 = vadd.f32 %v193_v18, %v111_v43  ;;  %v124_v46 = vadd.f32 %v193_v18, %v123_v44 }
  0x9f   :  { %154 = vst.msk [vmem:[%s354_s3 + $0x18] sm:$0xff] %vm150_vm1, %v112_v45 }
  0xa0   :  { %158 = vst.msk [vmem:[%s354_s3 + $0x38] sm:$0xff] %vm150_vm1, %v124_v46  ;;  %v135_v47 = vpop.f32.mrf.mxu2  ;;  %v147_v48 = vpop.f32.mrf.mxu3 }
  0xa1   :  { %v136_v49 = vadd.f32 %v193_v18, %v135_v47  ;;  %v148_v50 = vadd.f32 %v193_v18, %v147_v48 }
  0xa3   :  { %162 = vst.msk [vmem:[%s354_s3 + $0x58] sm:$0xff] %vm150_vm1, %v136_v49 }
  0xa4   :  { %166 = vst.msk [vmem:[%s354_s3 + $0x78] sm:$0xff] %vm150_vm1, %v148_v50 }

</bundles_post_ra>
